<compile_context>
chip_gen: v6e
topology: v6e:2x2x1
jax: 0.10.0
libtpu: 0.0.40
codegen_flags: <defaults>
</compile_context>

<pallas_src>
import jax
import jax.numpy as jnp
from jax.experimental import pallas as pl
from jax.experimental.pallas import tpu as pltpu

IN_FEATURES = 527
HIDDEN = 100
OUT_FEATURES = 2


def mlp_kernel(x_ref, w1_ref, b1_ref, w2d_ref, b2d_ref, o_ref):
    # x tile: (tb, 527) f32 from HBM; cast to bf16 in-register for the MXU (hidden under DMA).
    x_bf16 = x_ref[...].astype(jnp.bfloat16)
    # w1: (527, 100) bf16 — same block every grid step, so it stays resident in VMEM.
    h = jnp.dot(x_bf16, w1_ref[...], preferred_element_type=jnp.float32)
    h = jnp.maximum(h + b1_ref[...], 0.0)                     # bias + ReLU in f32
    # 2-class softmax == sigmoid of the logit difference.
    d = jnp.dot(h, w2d_ref[...], preferred_element_type=jnp.float32) + b2d_ref[...]  # (tb, 1)
    p0 = 0.5 * (jnp.tanh(0.5 * d) + 1.0)                      # numerically-stable sigmoid (EUP)
    col = jax.lax.broadcasted_iota(jnp.int32, (d.shape[0], OUT_FEATURES), 1)
    o_ref[...] = jnp.where(col == 0, p0, 1.0 - p0).astype(o_ref.dtype)


def _default_block_b(B):
    # 512-1024 row tiles amortize the ~0.35us/grid-step overhead; keep >=2 grid steps when
    # the batch allows so v7x's two TensorCores both get work on the "parallel" axis.
    if B <= 8:
        return max(B, 1)
    for cand in (1024, 512, 256, 128, 64, 32, 16, 8):
        if B >= 2 * cand:
            return cand
    return -(-B // 8) * 8


def _vmem_limit_bytes(block_b):
    lane_pad = lambda n: -(-n // 128) * 128
    sub_pad = lambda n: -(-n // 8) * 8
    x_tile = block_b * lane_pad(IN_FEATURES) * 4              # f32 x tile (cast in kernel)
    w1_buf = sub_pad(IN_FEATURES) * lane_pad(HIDDEN) * 2      # bf16 resident weights
    out_tile = block_b * 128 * 4                              # lane-padded f32 output tile
    hidden_tmp = block_b * lane_pad(HIDDEN) * 4               # f32 hidden activations
    small = 4 * 8 * 128 * 4                                   # biases / folded head
    need = 2 * (x_tile + w1_buf + out_tile + small) + hidden_tmp
    # Generous headroom, but capped so it stays safe on v7x (64 MiB physical VMEM).
    return int(min(max(2 * need, 32 << 20), 48 << 20))


def mlp_forward(x, w1, b1, w2, b2, *, block_b=None):
    B = x.shape[0]
    if block_b is None:
        block_b = _default_block_b(B)
    assert block_b % 8 == 0 or block_b == B, \
        "block_b must be a multiple of 8 (or equal to the full batch)"

    # Pad batch up to a multiple of block_b; padded rows are sliced off at the end.
    B_pad = -(-B // block_b) * block_b
    if B_pad != B:
        x = jnp.pad(x, ((0, B_pad - B), (0, 0)))
    grid = (B_pad // block_b,)

    x_f32 = x.astype(jnp.float32)
    # Small resident weights cast once in the wrapper (negligible traffic).
    w1_bf16 = w1.astype(jnp.bfloat16)
    b1_2d = b1.reshape(1, HIDDEN).astype(jnp.float32)
    # Fold the 2-class head: softmax([z0, z1]) == [sigmoid(z0-z1), 1-sigmoid(z0-z1)].
    w2_diff = (w2[:, 0] - w2[:, 1]).reshape(HIDDEN, 1).astype(jnp.float32)
    b2_diff = (b2[0] - b2[1]).reshape(1, 1).astype(jnp.float32)

    cost = pl.CostEstimate(
        flops=2 * B_pad * IN_FEATURES * HIDDEN + 2 * B_pad * HIDDEN,
        transcendentals=B_pad,
        bytes_accessed=(x_f32.size * 4 + w1_bf16.size * 2
                        + (HIDDEN + HIDDEN + 2) * 4 + B_pad * OUT_FEATURES * 4),
    )

    out = pl.pallas_call(
        mlp_kernel,
        out_shape=jax.ShapeDtypeStruct((B_pad, OUT_FEATURES), jnp.float32),
        grid_spec=pltpu.PrefetchScalarGridSpec(
            num_scalar_prefetch=0,
            grid=grid,
            in_specs=[
                pl.BlockSpec((block_b, IN_FEATURES), lambda i: (i, 0)),   # x tile over batch
                pl.BlockSpec((IN_FEATURES, HIDDEN), lambda i: (0, 0)),    # w1 (resident)
                pl.BlockSpec((1, HIDDEN), lambda i: (0, 0)),              # b1
                pl.BlockSpec((HIDDEN, 1), lambda i: (0, 0)),              # folded w2 column diff
                pl.BlockSpec((1, 1), lambda i: (0, 0)),                   # folded b2 diff
            ],
            out_specs=pl.BlockSpec((block_b, OUT_FEATURES), lambda i: (i, 0)),
        ),
        compiler_params=pltpu.CompilerParams(
            dimension_semantics=("parallel",),
            vmem_limit_bytes=_vmem_limit_bytes(block_b),
        ),
        cost_estimate=cost,
    )(x_f32, w1_bf16, b1_2d, w2_diff, b2_diff)

    return out[:B]


def init_params(key):
    # Deterministic init mimicking torch.nn.Linear default (uniform +/- 1/sqrt(fan_in)).
    k1, k2, k3, k4 = jax.random.split(key, 4)
    bound1 = 1.0 / jnp.sqrt(jnp.float32(IN_FEATURES))
    bound2 = 1.0 / jnp.sqrt(jnp.float32(HIDDEN))
    w1 = jax.random.uniform(k1, (IN_FEATURES, HIDDEN), jnp.float32, -bound1, bound1)
    b1 = jax.random.uniform(k2, (HIDDEN,), jnp.float32, -bound1, bound1)
    w2 = jax.random.uniform(k3, (HIDDEN, OUT_FEATURES), jnp.float32, -bound2, bound2)
    b2 = jax.random.uniform(k4, (OUT_FEATURES,), jnp.float32, -bound2, bound2)
    return w1, b1, w2, b2


def reference_forward(x, w1, b1, w2, b2):
    h = jnp.maximum(x @ w1 + b1, 0.0)
    logits = h @ w2 + b2
    return jax.nn.softmax(logits, axis=1)


if __name__ == "__main__":
    key = jax.random.PRNGKey(0)
    kx, kp, kx2 = jax.random.split(key, 3)

    w1, b1, w2, b2 = init_params(kp)

    # Small batch: single-tile path.
    B = 8
    x = jax.random.normal(kx, (B, IN_FEATURES), jnp.float32)
    out = jax.block_until_ready(mlp_forward(x, w1, b1, w2, b2))
    ref = reference_forward(x, w1, b1, w2, b2)
    assert out.shape == (B, OUT_FEATURES)
    # bf16 matmul inputs -> compare against f32 reference with a looser tolerance.
    assert jnp.allclose(out, ref, atol=2e-2, rtol=2e-2), "small-batch mismatch"
    assert jnp.allclose(jnp.sum(out, axis=1), jnp.ones((B,)), atol=1e-5)

    # Multi-tile path: exercises grid > 1 pipelining and batch padding (B not multiple of 8).
    B2 = 50
    x2 = jax.random.normal(kx2, (B2, IN_FEATURES), jnp.float32)
    out2 = jax.block_until_ready(mlp_forward(x2, w1, b1, w2, b2, block_b=16))
    ref2 = reference_forward(x2, w1, b1, w2, b2)
    assert out2.shape == (B2, OUT_FEATURES)
    assert jnp.allclose(out2, ref2, atol=2e-2, rtol=2e-2), "multi-tile mismatch"
    assert jnp.allclose(jnp.sum(out2, axis=1), jnp.ones((B2,)), atol=1e-5)

    print("KERNEL_OK")
</pallas_src>

<mosaic_0001>
module attributes {stable_mosaic.version = 11 : i64} {
  func.func @mlp_kernel(%arg0: i32, %arg1: memref<8x527xf32, #tpu.memory_space<vmem>>, %arg2: memref<527x100xbf16, #tpu.memory_space<vmem>>, %arg3: memref<1x100xf32, #tpu.memory_space<vmem>>, %arg4: memref<100x1xf32, #tpu.memory_space<vmem>>, %arg5: memref<1x1xf32, #tpu.memory_space<vmem>>, %arg6: memref<8x2xf32, #tpu.memory_space<vmem>>) attributes {dimension_semantics = [#tpu.dimension_semantics<parallel>], iteration_bounds = array<i64: 1>, scalar_prefetch = 0 : i64, scratch_operands = 0 : i64, tpu.core_type = #tpu.core_type<tc>, window_params = [{transform_indices = @transform_0, window_bounds = array<i64: 8, 527>}, {pipeline_mode = #tpu.pipeline_mode<synchronous>, transform_indices = @transform_1, window_bounds = array<i64: 527, 100>}, {pipeline_mode = #tpu.pipeline_mode<synchronous>, transform_indices = @transform_2, window_bounds = array<i64: 1, 100>}, {pipeline_mode = #tpu.pipeline_mode<synchronous>, transform_indices = @transform_3, window_bounds = array<i64: 100, 1>}, {pipeline_mode = #tpu.pipeline_mode<synchronous>, transform_indices = @transform_4, window_bounds = array<i64: 1, 1>}, {transform_indices = @transform_5, window_bounds = array<i64: 8, 2>}]} {
    %c0 = arith.constant 0 : index
    %c0_0 = arith.constant 0 : index
    %0 = vector.load %arg1[%c0, %c0_0] : memref<8x527xf32, #tpu.memory_space<vmem>>, vector<8x527xf32>
    %1 = arith.truncf %0 : vector<8x527xf32> to vector<8x527xbf16>
    %c0_1 = arith.constant 0 : index
    %c0_2 = arith.constant 0 : index
    %2 = vector.load %arg2[%c0_1, %c0_2] : memref<527x100xbf16, #tpu.memory_space<vmem>>, vector<527x100xbf16>
    %cst = arith.constant dense<0.000000e+00> : vector<8x100xf32>
    %3 = tpu.matmul %1, %2, %cst {dimension_numbers = #tpu.dot_dimension_numbers<[1], [0], [0], [1], [0, 0, 1, 1], [], []>} : vector<8x527xbf16>, vector<527x100xbf16>, vector<8x100xf32> -> vector<8x100xf32>
    %c0_3 = arith.constant 0 : index
    %c0_4 = arith.constant 0 : index
    %4 = vector.load %arg3[%c0_3, %c0_4] : memref<1x100xf32, #tpu.memory_space<vmem>>, vector<1x100xf32>
    %5 = vector.broadcast %4 : vector<1x100xf32> to vector<8x100xf32>
    %6 = arith.addf %3, %5 : vector<8x100xf32>
    %cst_5 = arith.constant 0.000000e+00 : f32
    %7 = vector.broadcast %cst_5 : f32 to vector<8x100xf32>
    %8 = arith.maximumf %6, %7 : vector<8x100xf32>
    %c0_6 = arith.constant 0 : index
    %c0_7 = arith.constant 0 : index
    %9 = vector.load %arg4[%c0_6, %c0_7] : memref<100x1xf32, #tpu.memory_space<vmem>>, vector<100x1xf32>
    %cst_8 = arith.constant dense<0.000000e+00> : vector<8x1xf32>
    %10 = tpu.matmul %8, %9, %cst_8 {dimension_numbers = #tpu.dot_dimension_numbers<[1], [0], [0], [1], [0, 0, 1, 1], [], []>} : vector<8x100xf32>, vector<100x1xf32>, vector<8x1xf32> -> vector<8x1xf32>
    %c0_9 = arith.constant 0 : index
    %c0_10 = arith.constant 0 : index
    %11 = vector.load %arg5[%c0_9, %c0_10] : memref<1x1xf32, #tpu.memory_space<vmem>>, vector<1x1xf32>
    %12 = vector.broadcast %11 : vector<1x1xf32> to vector<8x1xf32>
    %13 = arith.addf %10, %12 : vector<8x1xf32>
    %cst_11 = arith.constant 5.000000e-01 : f32
    %14 = vector.broadcast %cst_11 : f32 to vector<8x1xf32>
    %15 = arith.mulf %14, %13 : vector<8x1xf32>
    %16 = math.tanh %15 : vector<8x1xf32>
    %cst_12 = arith.constant 1.000000e+00 : f32
    %17 = vector.broadcast %cst_12 : f32 to vector<8x1xf32>
    %18 = arith.addf %16, %17 : vector<8x1xf32>
    %cst_13 = arith.constant 5.000000e-01 : f32
    %19 = vector.broadcast %cst_13 : f32 to vector<8x1xf32>
    %20 = arith.mulf %19, %18 : vector<8x1xf32>
    %21 = tpu.iota {dimensions = array<i32: 1>} : vector<8x2xi32>
    %c0_i32 = arith.constant 0 : i32
    %22 = vector.broadcast %c0_i32 : i32 to vector<8x2xi32>
    %23 = arith.cmpi eq, %21, %22 : vector<8x2xi32>
    %cst_14 = arith.constant 1.000000e+00 : f32
    %24 = vector.broadcast %cst_14 : f32 to vector<8x1xf32>
    %25 = arith.subf %24, %20 : vector<8x1xf32>
    %26 = vector.shape_cast %20 : vector<8x1xf32> to vector<8x1xf32>
    %27 = vector.broadcast %26 : vector<8x1xf32> to vector<8x2xf32>
    %28 = vector.shape_cast %25 : vector<8x1xf32> to vector<8x1xf32>
    %29 = vector.broadcast %28 : vector<8x1xf32> to vector<8x2xf32>
    %30 = arith.select %23, %27, %29 : vector<8x2xi1>, vector<8x2xf32>
    %c0_15 = arith.constant 0 : index
    %c0_16 = arith.constant 0 : index
    %31 = vector.load %arg6[%c0_15, %c0_16] : memref<8x2xf32, #tpu.memory_space<vmem>>, vector<8x2xf32>
    tpu.vector_store %arg6[%c0_15, %c0_16], %30 {strides = array<i32>} : memref<8x2xf32, #tpu.memory_space<vmem>>, vector<8x2xf32>,
    return
  }
  func.func @transform_0(%arg0: i32) -> (i32, i32) {
    %c0_i32 = arith.constant 0 : i32
    %c0_i32_0 = arith.constant 0 : i32
    return %arg0, %c0_i32 : i32, i32
  }
  func.func @transform_1(%arg0: i32) -> (i32, i32) {
    %c0_i32 = arith.constant 0 : i32
    %c0_i32_0 = arith.constant 0 : i32
    %c0_i32_1 = arith.constant 0 : i32
    return %c0_i32, %c0_i32_0 : i32, i32
  }
  func.func @transform_2(%arg0: i32) -> (i32, i32) {
    %c0_i32 = arith.constant 0 : i32
    %c0_i32_0 = arith.constant 0 : i32
    %c0_i32_1 = arith.constant 0 : i32
    return %c0_i32, %c0_i32_0 : i32, i32
  }
  func.func @transform_3(%arg0: i32) -> (i32, i32) {
    %c0_i32 = arith.constant 0 : i32
    %c0_i32_0 = arith.constant 0 : i32
    %c0_i32_1 = arith.constant 0 : i32
    return %c0_i32, %c0_i32_0 : i32, i32
  }
  func.func @transform_4(%arg0: i32) -> (i32, i32) {
    %c0_i32 = arith.constant 0 : i32
    %c0_i32_0 = arith.constant 0 : i32
    %c0_i32_1 = arith.constant 0 : i32
    return %c0_i32, %c0_i32_0 : i32, i32
  }
  func.func @transform_5(%arg0: i32) -> (i32, i32) {
    %c0_i32 = arith.constant 0 : i32
    %c0_i32_0 = arith.constant 0 : i32
    return %arg0, %c0_i32 : i32, i32
  }
}

</mosaic_0001>

<bundles_post_ra>
// kernel: tpu_custom_call.1
= control target key start
LH: loop header
LB: loop body
LE: loop exit
PB: predicated region body
PF: predicated region fallthrough
CT: control target
= control target key end

     0   :  { %vm307_vm0 = vcmask 1046528   ;;  %vm308_vm1 = vcmask 1047552   ;;  %v731_v31 = vmov 65535   ;;  %v732_v41 = vmov 0.0   ;;  %s928_s1 = inlined_call_operand.vmem [shape: bf16[527,100], index: 1, kind: input, shape index: {}]   ;;  %s929_s0 = inlined_call_operand.vmem [shape: f32[8,527], index: 0, kind: input, shape index: {}]   ;;  %s930_s3 = inlined_call_operand.vmem [shape: f32[100,1], index: 3, kind: input, shape index: {}]   ;;  %s931_s4 = inlined_call_operand.<no memory space> [shape: f32[1,1], index: 4, kind: input, shape index: {}]   ;;  %s932_s2 = inlined_call_operand.vmem [shape: f32[1,100], index: 2, kind: input, shape index: {}]   ;;  %s933_s5 = inlined_call_operand.vmem [shape: f32[8,2], index: 5, kind: output, shape index: {}]  }
   0x1   :  { %v696_v0 = vld [vmem:[%s928_s1 + $0x78] sm:$0xff]   ;;  %v700_v4 = vld [vmem:[%s928_s1 + $0x70] sm:$0xff]   ;;  %v704_v8 = vld [vmem:[%s928_s1 + $0x68] sm:$0xff]   ;;  %v309_v32 = vsel %vm307_vm0, 4294967295, %v731_v31  ;;  %vm459_vm2 = vcmask 1043456   ;;  %vm733_vm3 = vmmov 0   ;;  %v10_v61 = vstv %s931_s4 }
   0x2   :  { %v697_v1 = vld [vmem:[%s928_s1 + $0xf8] sm:$0xff]   ;;  %596 = vmatprep.subr.bf16.mxu0 %v696_v0  ;;  %v701_v5 = vld [vmem:[%s928_s1 + $0xf0] sm:$0xff]   ;;  %v705_v9 = vld [vmem:[%s928_s1 + $0xe8] sm:$0xff]   ;;  %v310_v42 = vsel %vm308_vm1, %v309_v32, 0  ;;  %vm303_vm4 = vcmask 121856   ;;  %vm455_vm5 = vcmask 818176  }
   0x3   :  { %v698_v2 = vld [vmem:[%s928_s1 + $0x38] sm:$0xff]   ;;  %618 = vmatprep.subr.bf16.mxu1 %v697_v1  ;;  %v702_v6 = vld [vmem:[%s928_s1 + $0x30] sm:$0xff]   ;;  %v706_v10 = vld [vmem:[%s928_s1 + $0x28] sm:$0xff]   ;;  %11 = vst [vmem:[#allocation2] sm:$0x1] %v10_v61  ;;  %vm552_vm7 = vcmask 15360  }
   0x4   :  { %v699_v3 = vld [vmem:[%s928_s1 + $0xb8] sm:$0xff]   ;;  %597 = vmatpush3.bf16.msra.mxu0 %v698_v2  ;;  %v703_v7 = vld [vmem:[%s928_s1 + $0xb0] sm:$0xff]   ;;  %v707_v11 = vld [vmem:[%s928_s1 + $0xa8] sm:$0xff]  }
   0x5   :  { %619 = vmatpush3.bf16.msra.mxu1 %v699_v3  ;;  %598 = vmatprep.subr.bf16.mxu0 %v700_v4  ;;  %v708_v12 = vld [vmem:[%s928_s1 + $0x60] sm:$0xff]   ;;  %v712_v16 = vld [vmem:[%s928_s1 + $0x58] sm:$0xff]   ;;  %v716_v20 = vld [vmem:[%s928_s1 + $0x50] sm:$0xff]  }
   0x6   :  { %620 = vmatprep.subr.bf16.mxu1 %v701_v5  ;;  %v709_v13 = vld [vmem:[%s928_s1 + $0xe0] sm:$0xff]   ;;  %v713_v17 = vld [vmem:[%s928_s1 + $0xd8] sm:$0xff]   ;;  %v717_v21 = vld [vmem:[%s928_s1 + $0xd0] sm:$0xff]  }
   0x7   :  { %v710_v14 = vld [vmem:[%s928_s1 + $0x20] sm:$0xff]   ;;  %v714_v18 = vld [vmem:[%s928_s1 + $0x18] sm:$0xff]   ;;  %v718_v22 = vld [vmem:[%s928_s1 + $0x10] sm:$0xff]  }
   0x8   :  { %599 = vmatpush3.bf16.msra.mxu0 %v702_v6  ;;  %v711_v15 = vld [vmem:[%s928_s1 + $0xa0] sm:$0xff]   ;;  %v715_v19 = vld [vmem:[%s928_s1 + $0x98] sm:$0xff]   ;;  %v719_v23 = vld [vmem:[%s928_s1 + $0x90] sm:$0xff]  }
   0x9   :  { %621 = vmatpush3.bf16.msra.mxu1 %v703_v7  ;;  %600 = vmatprep.subr.bf16.mxu0 %v704_v8  ;;  %v720_v24 = vld [vmem:[%s928_s1 + $0x48] sm:$0xff]   ;;  %v724_v28 = vld [vmem:[%s928_s1 + $0x40] sm:$0xff]   ;;  %v26_v35 = vld [vmem:[%s929_s0 + $0x18] sm:$0xff] }
   0xa   :  { %622 = vmatprep.subr.bf16.mxu1 %v705_v9  ;;  %v721_v25 = vld [vmem:[%s928_s1 + $0xc8] sm:$0xff]   ;;  %v725_v29 = vld [vmem:[%s928_s1 + $0xc0] sm:$0xff]   ;;  %v31_v38 = vpack.c.bf16 %v26_v35, %v26_v35  ;;  %v25_v40 = vld [vmem:[%s929_s0 + $0x10] sm:$0xff] }
   0xb   :  { %v722_v26 = vld [vmem:[%s928_s1 + $0x8] sm:$0xff]   ;;  %v726_v30 = vld [vmem:[%s928_s1] sm:$0xff]   ;;  %v30_v43 = vpack.c.bf16 %v25_v40, %v25_v40  ;;  %v446_v47 = vld [vmem:[%s930_s3 + $0x58] sm:$0xff] }
   0xc   :  { %601 = vmatpush3.bf16.msra.mxu0 %v706_v10  ;;  %v723_v27 = vld [vmem:[%s928_s1 + $0x88] sm:$0xff]   ;;  %v727_v33 = vld [vmem:[%s928_s1 + $0x80] sm:$0xff]   ;;  %386 = vmatprep.mubr.bf16.mxu1 %v31_v38  ;;  %v445_v49 = vld [vmem:[%s930_s3 + $0x50] sm:$0xff] }
   0xd   :  { %623 = vmatpush3.bf16.msra.mxu1 %v707_v11  ;;  %602 = vmatprep.subr.bf16.mxu0 %v708_v12  ;;  %v24_v34 = vld [vmem:[%s929_s0 + $0x8] sm:$0xff]  ;;  %v23_v36 = vld [vmem:[%s929_s0] sm:$0xff]  ;;  %v442_v53 = vld [vmem:[%s930_s3 + $0x38] sm:$0xff] }
   0xe   :  { %624 = vmatprep.subr.bf16.mxu1 %v709_v13  ;;  %v29_v37 = vpack.c.bf16 %v24_v34, %v24_v34  ;;  %v28_v39 = vpack.c.bf16 %v23_v36, %v23_v36  ;;  %v728_v44 = vld [vmem:[%s928_s1 + $0x100] sm:$0xff]   ;;  %v444_v51 = vld [vmem:[%s930_s3 + $0x48] sm:$0xff]  ;;  %v441_v54 = vld [vmem:[%s930_s3 + $0x30] sm:$0xff] }
   0xf   :  { %v447_v45 = vld [vmem:[%s930_s3 + $0x60] sm:$0xf]  ;;  %v312_v46 = vand.u32 %v728_v44, %v310_v42  ;;  %v440_v55 = vld [vmem:[%s930_s3 + $0x28] sm:$0xff]  ;;  %v438_v57 = vld [vmem:[%s930_s3 + $0x18] sm:$0xff] }
  0x10   :  { %603 = vmatpush3.bf16.msra.mxu0 %v710_v14  ;;  %346 = vmatprep.mubr.bf16.mxu0 %v29_v37  ;;  %v27_v48 = vld [vmem:[%s929_s0 + $0x20] sm:$0xff]  ;;  %v437_v58 = vld [vmem:[%s930_s3 + $0x10] sm:$0xff]  ;;  %v436_v59 = vld [vmem:[%s930_s3 + $0x8] sm:$0xff] }
  0x11   :  { %625 = vmatpush3.bf16.msra.mxu1 %v711_v15  ;;  %604 = vmatprep.subr.bf16.mxu0 %v712_v16  ;;  %v32_v50 = vpack.c.bf16 %v27_v48, %v27_v48  ;;  %v443_v52 = vld [vmem:[%s930_s3 + $0x40] sm:$0xff] }
  0x12   :  { %626 = vmatprep.subr.bf16.mxu1 %v713_v17  ;;  %v439_v56 = vld [vmem:[%s930_s3 + $0x20] sm:$0xff]  ;;  %v734_v17 = vmov 0  }
  0x13   :  { %v435_v60 = vld [vmem:[%s930_s3] sm:$0xff]  ;;  %695 = vset.pattern.permute.xlu0 %v734_v17 }
  0x14   :  { %605 = vmatpush3.bf16.msra.mxu0 %v714_v18  ;;  %v558_v0 = vld [vmem:[%s932_s2] ss:$0 sm:$0xff] }
  0x15   :  { %627 = vmatpush3.bf16.msra.mxu1 %v715_v19  ;;  %606 = vmatprep.subr.bf16.mxu0 %v716_v20  ;;  %v593_v18 = vld [vmem:[#allocation2] ss:$0 sm:$0xff] }
  0x16   :  { %628 = vmatprep.subr.bf16.mxu1 %v717_v21 }
  0x18   :  { %607 = vmatpush3.bf16.msra.mxu0 %v718_v22 }
  0x19   :  { %629 = vmatpush3.bf16.msra.mxu1 %v719_v23  ;;  %608 = vmatprep.subr.bf16.mxu0 %v720_v24 }
  0x1a   :  { %630 = vmatprep.subr.bf16.mxu1 %v721_v25 }
  0x1c   :  { %609 = vmatpush3.bf16.msra.mxu0 %v722_v26 }
  0x1d   :  { %631 = vmatpush3.bf16.msra.mxu1 %v723_v27  ;;  %610 = vmatprep.subr.bf16.mxu0 %v724_v28  ;;  %v537_v27 = vlaneseq }
  0x1e   :  { %632 = vmatprep.subr.bf16.mxu1 %v725_v29 }
  0x1f   :  { %v538_v28 = vand.u32 127, %v537_v27 }
  0x20   :  { %611 = vmatpush3.bf16.msra.mxu0 %v726_v30 }
  0x21   :  { %633 = vmatpush3.bf16.msra.mxu1 %v727_v33  ;;  %656 = vmatprep.subr.bf16.mxu0 %v732_v41  ;;  %vm539_vm6 = vcmp.eq.s32.totalorder %v538_v28, 0 }
  0x22   :  { %662 = vmatprep.subr.mxu1 %v732_v41 }
  0x23   :  { %347 = vmatmul.mubr.bf16.vlgmr.msra.gmra.mxu0 %v28_v39 }
  0x24   :  { %387 = vmatmul.mubr.bf16.vlgmr.msra.gmra.mxu1 %v30_v43  ;;  %658 = vmatprep.mubr.msk.bf16.mxu0 %vm733_vm3, %v732_v41 }
  0x25   :  { %663 = vmatpush3.msk.msra.mxu1 %vm459_vm2, %v447_v45  ;;  %657 = vmatpush3.bf16.msra.mxu0 %v312_v46 }
  0x26   :  { %664 = vmatprep.subr.mxu1 %v732_v41  ;;  %688 = vmatprep.mubr.msk.f32.mxu1 %vm733_vm3, %v732_v41 }
  0x27   :  { %665 = vmatpush3.msra.mxu1 %v446_v47 }
  0x28   :  { %666 = vmatprep.subr.mxu1 %v732_v41 }
  0x29   :  { %667 = vmatpush3.msra.mxu1 %v445_v49 }
  0x2a   :  { %668 = vmatprep.subr.mxu1 %v732_v41 }
  0x2b   :  { %669 = vmatpush3.msra.mxu1 %v444_v51  ;;  %659 = vmatmul.mubr.msk.bf16.vlgmr.msra.gmra.mxu0 %vm303_vm4, %v32_v50 }
  0x2c   :  { %670 = vmatprep.subr.mxu1 %v732_v41 }
  0x2d   :  { %671 = vmatpush3.msra.mxu1 %v443_v52 }
  0x2e   :  { %672 = vmatprep.subr.mxu1 %v732_v41 }
  0x2f   :  { %673 = vmatpush3.msra.mxu1 %v442_v53 }
  0x30   :  { %674 = vmatprep.subr.mxu1 %v732_v41 }
  0x31   :  { %675 = vmatpush3.msra.mxu1 %v441_v54 }
  0x32   :  { %676 = vmatprep.subr.mxu1 %v732_v41 }
  0x33   :  { %677 = vmatpush3.msra.mxu1 %v440_v55 }
  0x34   :  { %678 = vmatprep.subr.mxu1 %v732_v41 }
  0x35   :  { %679 = vmatpush3.msra.mxu1 %v439_v56 }
  0x36   :  { %680 = vmatprep.subr.mxu1 %v732_v41 }
  0x37   :  { %681 = vmatpush3.msra.mxu1 %v438_v57 }
  0x38   :  { %682 = vmatprep.subr.mxu1 %v732_v41 }
  0x39   :  { %683 = vmatpush3.msra.mxu1 %v437_v58 }
  0x3a   :  { %684 = vmatprep.subr.mxu1 %v732_v41 }
  0x3b   :  { %685 = vmatpush3.msra.mxu1 %v436_v59 }
  0x3c   :  { %686 = vmatprep.subr.mxu1 %v732_v41 }
  0x3d   :  { %687 = vmatpush3.msra.mxu1 %v435_v60 }
  0xe3   :  { %v612_v62 = vpop.f32.mrf.mxu0 }
  0xe4   :  { %v634_v63 = vpop.f32.mrf.mxu1 }
  0xe5   :  { %v613_v1 = vpop.f32.mrf.mxu0 }
  0xe6   :  { %v635_v2 = vpop.f32.mrf.mxu1  ;;  %v614_v3 = vadd.f32 %v613_v1, %v612_v62 }
  0xe7   :  { %v615_v4 = vpop.f32.mrf.mxu0  ;;  %v636_v7 = vadd.f32 %v635_v2, %v634_v63 }
  0xe8   :  { %v637_v5 = vpop.f32.mrf.mxu1  ;;  %v349_v6 = vadd.f32 %v614_v3, %v558_v0 }
  0xe9   :  { %v616_v8 = vpop.f32.mrf.mxu0 }
  0xea   :  { %v638_v9 = vpop.f32.mrf.mxu1  ;;  %v389_v10 = vadd.f32 %v636_v7, %v349_v6 }
  0xeb   :  { %v428_v11 = vpop.f32.mrf.mxu0 }
  0xec   :  { %v429_v12 = vadd.f32 %v428_v11, %v389_v10 }
  0xed   :  { %v660_v13 = vpop.f32.mrf.mxu0 }
  0xee   :  { %v434_v14 = vmax.f32 %v429_v12, 0.0 }
  0xef   :  { %v431_v15 = vpop.f32.mrf.mxu0 }
  0xf0   :  { %689 = vmatmul.mubr.msk.f32.vlgmr.msra.gmra.mxu1 %vm455_vm5, %v434_v14 }
  0xf1   :  { %v661_v16 = vpop.f32.mrf.mxu0 }
 0x1b0   :  { %v529_v19 = vpop.f32.mrf.mxu1 }
 0x1b1   :  { %v530_v20 = vadd.f32 %v593_v18, %v529_v19 }
 0x1b2   :  { %v690_v21 = vpop.f32.mrf.mxu1 }
 0x1b3   :  { %v533_v22 = vmul.f32 0.5, %v530_v20 }
 0x1b5   :  { %729 = vtanh.f32 %v533_v22 }
 0x1c2   :  { %v730_v23 = vpop.eup %729 }
 0x1c3   :  { %v535_v24 = vadd.f32 1.0, %v730_v23 }
 0x1c5   :  { %v536_v25 = vmul.f32 0.5, %v535_v24 }
 0x1c7   :  { %543 = vperm.xlu0 %695, %v536_v25   ;;  %v540_v26 = vsub.f32 1.0, %v536_v25 }
 0x1cb   :  { %548 = vperm.xlu0 %695, %v540_v26  }
 0x242   :  { %v544_v29 = vpop.permute.xlu0 %543 }
 0x246   :  { %v549_v30 = vpop.permute.xlu0 %548 }
 0x247   :  { %v551_v31 = vsel %vm539_vm6, %v544_v29, %v549_v30 }
 0x248   :  { %553 = vst.msk [vmem:[%s933_s5] sm:$0xff] %vm552_vm7, %v551_v31 }

</bundles_post_ra>
